<compile_context>
chip_gen: v6e
topology: v6e:2x2x1
jax: 0.10.0
libtpu: 0.0.40
codegen_flags: <defaults>
</compile_context>

<pallas_src>
import functools
import numpy as np
import jax
import jax.numpy as jnp
from jax import lax
from jax.experimental import pallas as pl
from jax.experimental.pallas import tpu as pltpu


# ----------------------------------------------------------------------------
# Kernel 1: Q/K linear projections (bf16 MXU matmuls, f32 accumulation).
# ----------------------------------------------------------------------------
def _qk_projection_kernel(x_ref, wq_ref, bq_ref, wk_ref, bk_ref, q_ref, k_ref):
    x = x_ref[...]                                              # (tq, D) bf16
    q = jnp.dot(x, wq_ref[...], preferred_element_type=jnp.float32) + bq_ref[...]
    k = jnp.dot(x, wk_ref[...], preferred_element_type=jnp.float32) + bk_ref[...]
    q_ref[...] = q.astype(q_ref.dtype)
    k_ref[...] = k.astype(k_ref.dtype)


# ----------------------------------------------------------------------------
# Kernel 2: masked scaled-dot attention.  grid = (row_tile i, head h) with the
# head axis as the reduction axis for the head-mean (VMEM accumulator).
# Outputs: mean_att (bf16), per-(head, row) softmax max m and sum l (f32).
# ----------------------------------------------------------------------------
def _attention_kernel(q_ref, k_ref, bias_ref, mean_ref, m_ref, l_ref, acc_ref,
                      *, heads, d_k):
    h = pl.program_id(1)

    @pl.when(h == 0)
    def _():
        acc_ref[...] = jnp.zeros_like(acc_ref)

    qh = q_ref[0]                                               # (tq, d_k) bf16
    kh = k_ref[0]                                               # (Np, d_k) bf16
    # contract last dims of both (trans_b form) -> no XLU transpose per head.
    s = lax.dot_general(qh, kh, (((1,), (1,)), ((), ())),
                        preferred_element_type=jnp.float32)     # (tq, Np) f32
    s = s * jnp.float32(1.0 / np.sqrt(d_k)) + bias_ref[...].astype(jnp.float32)

    # masked row softmax; denominator >= 1 always (max element gives exp(0)=1).
    m = jnp.max(s, axis=-1, keepdims=True)                      # (tq, 1)
    e = jnp.exp(s - m)
    l = jnp.sum(e, axis=-1, keepdims=True)                      # (tq, 1)
    a = e * pl.reciprocal(l, approx=True)

    acc_ref[...] += a
    m_ref[0] = m
    l_ref[0] = l

    @pl.when(h == heads - 1)
    def _():
        mean_ref[...] = (acc_ref[...] * jnp.float32(1.0 / heads)
                         ).astype(mean_ref.dtype)


# ----------------------------------------------------------------------------
# Kernel 3: explicit Euler integration of dx/dt = P x - x.
# grid = (step s, row_tile i); P row tiles streamed (bf16), state x resident in
# VMEM scratch: f32 state buffer + bf16 mirror for the MXU, both committed once
# per step at the last row tile.
# ----------------------------------------------------------------------------
def _euler_kernel(p_ref, x_ref, o_ref, x_buf, new_buf, xbf_buf, *, dt, tm):
    s = pl.program_id(0)
    i = pl.program_id(1)
    row0 = pl.multiple_of(i * tm, tm)

    @pl.when(jnp.logical_and(s == 0, i == 0))
    def _():
        x0 = x_ref[...].astype(jnp.float32)
        x_buf[...] = x0
        xbf_buf[...] = x0.astype(jnp.bfloat16)

    x_tile = x_buf[pl.ds(row0, tm), :]                          # (tm, D) f32
    ax = jnp.dot(p_ref[...], xbf_buf[...],
                 preferred_element_type=jnp.float32)            # (tm, D) f32
    x_new = (1.0 - dt) * x_tile + dt * ax                       # == x + dt*(Px - x)
    new_buf[pl.ds(row0, tm), :] = x_new
    o_ref[...] = x_new.astype(o_ref.dtype)

    @pl.when(i == pl.num_programs(1) - 1)                       # commit step state
    def _():
        xn = new_buf[...]
        x_buf[...] = xn
        xbf_buf[...] = xn.astype(jnp.bfloat16)


# ----------------------------------------------------------------------------
# Wrapper (AttODEblock.forward): attention weights + Euler ODE solve.
# ----------------------------------------------------------------------------
def att_ode_block_forward(x, wq, bq, wk, bk, edge_index, *, heads, step_size,
                          t1=1.0, block_rows=128):
    n, d = x.shape
    a_dim = wq.shape[1]
    assert a_dim % heads == 0
    d_k = a_dim // heads

    # pad node count to a multiple of 128 so every sublane/lane tile is dense.
    n_pad = ((n + 127) // 128) * 128
    tq = min(block_rows, n_pad)
    n_row_tiles = n_pad // tq

    xp = jnp.zeros((n_pad, d), jnp.float32).at[:n].set(x.astype(jnp.float32))

    # bf16 MXU inputs (f32 accumulation happens inside the kernels).
    x_bf = xp.astype(jnp.bfloat16)
    wq_bf = wq.astype(jnp.bfloat16)
    wk_bf = wk.astype(jnp.bfloat16)
    bq_f = bq.astype(jnp.float32).reshape(1, a_dim)
    bk_f = bk.astype(jnp.float32).reshape(1, a_dim)

    q, k = pl.pallas_call(
        _qk_projection_kernel,
        grid=(n_row_tiles,),
        in_specs=[pl.BlockSpec((tq, d), lambda i: (i, 0)),
                  pl.BlockSpec((d, a_dim), lambda i: (0, 0)),
                  pl.BlockSpec((1, a_dim), lambda i: (0, 0)),
                  pl.BlockSpec((d, a_dim), lambda i: (0, 0)),
                  pl.BlockSpec((1, a_dim), lambda i: (0, 0))],
        out_specs=(pl.BlockSpec((tq, a_dim), lambda i: (i, 0)),
                   pl.BlockSpec((tq, a_dim), lambda i: (i, 0))),
        out_shape=(jax.ShapeDtypeStruct((n_pad, a_dim), jnp.bfloat16),
                   jax.ShapeDtypeStruct((n_pad, a_dim), jnp.bfloat16)),
        compiler_params=pltpu.CompilerParams(dimension_semantics=("parallel",)),
    )(x_bf, wq_bf, bq_f, wk_bf, bk_f)

    # per-head layout (heads, Np, d_k): last dim full, sublane dim = rows.
    qh = jnp.transpose(q.reshape(n_pad, heads, d_k), (1, 0, 2))
    kh = jnp.transpose(k.reshape(n_pad, heads, d_k), (1, 0, 2))

    # additive mask bias: 0 on edges, -1e9 elsewhere (incl. padded rows/cols).
    adj = jnp.zeros((n_pad, n_pad), jnp.float32
                    ).at[edge_index[0], edge_index[1]].set(1.0)
    bias = jnp.where(adj > 0, 0.0, -1e9).astype(jnp.bfloat16)

    mean_att, m_rows, l_rows = pl.pallas_call(
        functools.partial(_attention_kernel, heads=heads, d_k=d_k),
        grid=(n_row_tiles, heads),
        in_specs=[pl.BlockSpec((1, tq, d_k), lambda i, h: (h, i, 0)),
                  pl.BlockSpec((1, n_pad, d_k), lambda i, h: (h, 0, 0)),
                  pl.BlockSpec((tq, n_pad), lambda i, h: (i, 0))],
        out_specs=(pl.BlockSpec((tq, n_pad), lambda i, h: (i, 0)),
                   pl.BlockSpec((1, tq, 1), lambda i, h: (h, i, 0)),
                   pl.BlockSpec((1, tq, 1), lambda i, h: (h, i, 0))),
        out_shape=(jax.ShapeDtypeStruct((n_pad, n_pad), jnp.bfloat16),
                   jax.ShapeDtypeStruct((heads, n_pad, 1), jnp.float32),
                   jax.ShapeDtypeStruct((heads, n_pad, 1), jnp.float32)),
        scratch_shapes=[pltpu.VMEM((tq, n_pad), jnp.float32)],
        compiler_params=pltpu.CompilerParams(
            dimension_semantics=("parallel", "arbitrary"),
            vmem_limit_bytes=64 * 1024 * 1024),
        cost_estimate=pl.CostEstimate(
            flops=2 * heads * n_pad * n_pad * d_k + 6 * heads * n_pad * n_pad,
            transcendentals=heads * n_pad * n_pad,
            bytes_accessed=(heads * n_pad * n_pad * 2
                            + 2 * heads * n_pad * d_k * 2
                            + n_pad * n_pad * 2
                            + 2 * heads * n_pad * 4)),
    )(qh, kh, bias)

    # per-edge attention weights (E, heads): reconstructed from the tiny
    # (q, k, m, l) kernel outputs -> no [heads, N, N] HBM round-trip + gather.
    src, dst = edge_index[0], edge_index[1]
    prods = jnp.sum(qh[:, src, :].astype(jnp.float32)
                    * kh[:, dst, :].astype(jnp.float32), axis=-1)
    prods = prods * jnp.float32(1.0 / np.sqrt(d_k))              # (heads, E)
    att_edges = (jnp.exp(prods - m_rows[:, src, 0]) / l_rows[:, src, 0]).T

    # explicit-Euler solve of dx/dt = A_mean x - x over [0, t1].
    n_steps = int(round(t1 / float(step_size)))
    tm = tq
    z_pad = pl.pallas_call(
        functools.partial(_euler_kernel, dt=float(step_size), tm=tm),
        grid=(n_steps, n_row_tiles),
        in_specs=[pl.BlockSpec((tm, n_pad), lambda s, i: (i, 0)),
                  pl.BlockSpec((n_pad, d), lambda s, i: (0, 0))],
        out_specs=pl.BlockSpec((tm, d), lambda s, i: (i, 0)),
        out_shape=jax.ShapeDtypeStruct((n_pad, d), x.dtype),
        scratch_shapes=[pltpu.VMEM((n_pad, d), jnp.float32),
                        pltpu.VMEM((n_pad, d), jnp.float32),
                        pltpu.VMEM((n_pad, d), jnp.bfloat16)],
        compiler_params=pltpu.CompilerParams(
            dimension_semantics=("arbitrary", "arbitrary"),
            vmem_limit_bytes=64 * 1024 * 1024),
        cost_estimate=pl.CostEstimate(
            flops=2 * n_steps * n_pad * n_pad * d,
            transcendentals=0,
            bytes_accessed=n_steps * n_pad * n_pad * 2 + 2 * n_pad * d * 4),
    )(mean_att, xp)

    return z_pad[:n], att_edges


# ----------------------------------------------------------------------------
# Pure-JAX reference (mirrors the kernels' precision policy: bf16 matmul
# inputs, f32 accumulation/softmax, bf16 mean-attention matrix for the ODE).
# ----------------------------------------------------------------------------
def _reference(x, wq, bq, wk, bk, edge_index, heads, d_k, step_size, n_nodes,
               t1=1.0):
    f32 = jnp.float32
    xb = x.astype(jnp.bfloat16).astype(f32)
    wqb = wq.astype(jnp.bfloat16).astype(f32)
    wkb = wk.astype(jnp.bfloat16).astype(f32)
    q = (xb @ wqb + bq.astype(f32)).astype(jnp.bfloat16).astype(f32)
    k = (xb @ wkb + bk.astype(f32)).astype(jnp.bfloat16).astype(f32)
    qh = q.reshape(n_nodes, heads, d_k)
    kh = k.reshape(n_nodes, heads, d_k)
    src = qh[edge_index[0]]
    dst = kh[edge_index[1]]
    prods = jnp.sum(src * dst, axis=-1) * f32(1.0 / np.sqrt(d_k))   # (E, heads)
    grp = edge_index[0]                       # attention_norm_idx = 0
    m = jax.ops.segment_max(prods, grp, num_segments=n_nodes)
    e = jnp.exp(prods - m[grp])
    ssum = jax.ops.segment_sum(e, grp, num_segments=n_nodes)
    att = e / ssum[grp]                       # (E, heads)
    mean_att = att.mean(axis=-1)
    P = jnp.zeros((n_nodes, n_nodes), f32
                  ).at[edge_index[0], edge_index[1]].set(mean_att)
    Pb = P.astype(jnp.bfloat16).astype(f32)
    n_steps = int(round(t1 / float(step_size)))
    dt = float(step_size)
    z = x.astype(f32)
    for _ in range(n_steps):
        zb = z.astype(jnp.bfloat16).astype(f32)
        z = (1.0 - dt) * z + dt * (Pb @ zb)
    return z, att


if __name__ == "__main__":
    N = 16            # num_nodes
    D = 32            # hidden_dim (in_features)
    A = 32            # attention_dim
    HEADS = 4
    D_K = A // HEADS
    STEP = 0.25       # args.step_size, euler method, t = [0, 1]

    key = jax.random.PRNGKey(0)
    kx, kbq, kbk = jax.random.split(key, 3)
    x = jax.random.normal(kx, (N, D), jnp.float32)

    # nn.Linear params: weight init constant 1e-5; bias uniform(+-1/sqrt(in)).
    wq = jnp.full((D, A), 1e-5, jnp.float32)       # stored transposed: x @ wq
    wk = jnp.full((D, A), 1e-5, jnp.float32)
    bound = 1.0 / np.sqrt(D)
    bq = jax.random.uniform(kbq, (1, A), jnp.float32, -bound, bound)
    bk = jax.random.uniform(kbk, (1, A), jnp.float32, -bound, bound)

    # synthetic graph: bidirectional ring + self loops (get_rw_adj adds loops).
    edges = []
    for i in range(N):
        edges.append((i, (i + 1) % N))
        edges.append((i, (i - 1) % N))
        edges.append((i, i))
    edge_index = jnp.asarray(np.asarray(edges, dtype=np.int32).T)   # (2, E)

    z, att_edges = att_ode_block_forward(
        x, wq, bq, wk, bk, edge_index, heads=HEADS, step_size=STEP)
    z = jax.block_until_ready(z)
    att_edges = jax.block_until_ready(att_edges)

    z_ref, att_ref = _reference(x, wq, bq, wk, bk, edge_index, HEADS, D_K,
                                STEP, N)
    assert z.shape == (N, D)
    assert att_edges.shape == (edge_index.shape[1], HEADS)
    np.testing.assert_allclose(np.asarray(att_edges), np.asarray(att_ref),
                               rtol=2e-3, atol=2e-4)
    # z uses bf16-stored mean attention + approx reciprocal, hence the looser
    # (still bug-catching) tolerance vs the matched-precision reference.
    np.testing.assert_allclose(np.asarray(z), np.asarray(z_ref),
                               rtol=2e-2, atol=2e-2)
    print("KERNEL_OK")
</pallas_src>

<mosaic_0001>
module attributes {stable_mosaic.version = 11 : i64} {
  func.func @_qk_projection_kernel(%arg0: i32, %arg1: memref<128x32xbf16, #tpu.memory_space<vmem>>, %arg2: memref<32x32xbf16, #tpu.memory_space<vmem>>, %arg3: memref<1x32xf32, #tpu.memory_space<vmem>>, %arg4: memref<32x32xbf16, #tpu.memory_space<vmem>>, %arg5: memref<1x32xf32, #tpu.memory_space<vmem>>, %arg6: memref<128x32xbf16, #tpu.memory_space<vmem>>, %arg7: memref<128x32xbf16, #tpu.memory_space<vmem>>) attributes {dimension_semantics = [#tpu.dimension_semantics<parallel>], iteration_bounds = array<i64: 1>, scalar_prefetch = 0 : i64, scratch_operands = 0 : i64, tpu.core_type = #tpu.core_type<tc>, window_params = [{transform_indices = @transform_0, window_bounds = array<i64: 128, 32>}, {pipeline_mode = #tpu.pipeline_mode<synchronous>, transform_indices = @transform_1, window_bounds = array<i64: 32, 32>}, {pipeline_mode = #tpu.pipeline_mode<synchronous>, transform_indices = @transform_2, window_bounds = array<i64: 1, 32>}, {pipeline_mode = #tpu.pipeline_mode<synchronous>, transform_indices = @transform_3, window_bounds = array<i64: 32, 32>}, {pipeline_mode = #tpu.pipeline_mode<synchronous>, transform_indices = @transform_4, window_bounds = array<i64: 1, 32>}, {transform_indices = @transform_5, window_bounds = array<i64: 128, 32>}, {transform_indices = @transform_6, window_bounds = array<i64: 128, 32>}]} {
    %c0 = arith.constant 0 : index
    %c0_0 = arith.constant 0 : index
    %0 = vector.load %arg1[%c0, %c0_0] : memref<128x32xbf16, #tpu.memory_space<vmem>>, vector<128x32xbf16>
    %c0_1 = arith.constant 0 : index
    %c0_2 = arith.constant 0 : index
    %1 = vector.load %arg2[%c0_1, %c0_2] : memref<32x32xbf16, #tpu.memory_space<vmem>>, vector<32x32xbf16>
    %cst = arith.constant dense<0.000000e+00> : vector<128x32xf32>
    %2 = tpu.matmul %0, %1, %cst {dimension_numbers = #tpu.dot_dimension_numbers<[1], [0], [0], [1], [0, 0, 1, 1], [], []>} : vector<128x32xbf16>, vector<32x32xbf16>, vector<128x32xf32> -> vector<128x32xf32>
    %c0_3 = arith.constant 0 : index
    %c0_4 = arith.constant 0 : index
    %3 = vector.load %arg3[%c0_3, %c0_4] : memref<1x32xf32, #tpu.memory_space<vmem>>, vector<1x32xf32>
    %4 = vector.broadcast %3 : vector<1x32xf32> to vector<128x32xf32>
    %5 = arith.addf %2, %4 : vector<128x32xf32>
    %c0_5 = arith.constant 0 : index
    %c0_6 = arith.constant 0 : index
    %6 = vector.load %arg4[%c0_5, %c0_6] : memref<32x32xbf16, #tpu.memory_space<vmem>>, vector<32x32xbf16>
    %cst_7 = arith.constant dense<0.000000e+00> : vector<128x32xf32>
    %7 = tpu.matmul %0, %6, %cst_7 {dimension_numbers = #tpu.dot_dimension_numbers<[1], [0], [0], [1], [0, 0, 1, 1], [], []>} : vector<128x32xbf16>, vector<32x32xbf16>, vector<128x32xf32> -> vector<128x32xf32>
    %c0_8 = arith.constant 0 : index
    %c0_9 = arith.constant 0 : index
    %8 = vector.load %arg5[%c0_8, %c0_9] : memref<1x32xf32, #tpu.memory_space<vmem>>, vector<1x32xf32>
    %9 = vector.broadcast %8 : vector<1x32xf32> to vector<128x32xf32>
    %10 = arith.addf %7, %9 : vector<128x32xf32>
    %11 = arith.truncf %5 : vector<128x32xf32> to vector<128x32xbf16>
    %c0_10 = arith.constant 0 : index
    %c0_11 = arith.constant 0 : index
    %12 = vector.load %arg6[%c0_10, %c0_11] : memref<128x32xbf16, #tpu.memory_space<vmem>>, vector<128x32xbf16>
    tpu.vector_store %arg6[%c0_10, %c0_11], %11 {strides = array<i32>} : memref<128x32xbf16, #tpu.memory_space<vmem>>, vector<128x32xbf16>,
    %13 = arith.truncf %10 : vector<128x32xf32> to vector<128x32xbf16>
    %c0_12 = arith.constant 0 : index
    %c0_13 = arith.constant 0 : index
    %14 = vector.load %arg7[%c0_12, %c0_13] : memref<128x32xbf16, #tpu.memory_space<vmem>>, vector<128x32xbf16>
    tpu.vector_store %arg7[%c0_12, %c0_13], %13 {strides = array<i32>} : memref<128x32xbf16, #tpu.memory_space<vmem>>, vector<128x32xbf16>,
    return
  }
  func.func @transform_0(%arg0: i32) -> (i32, i32) {
    %c0_i32 = arith.constant 0 : i32
    %c0_i32_0 = arith.constant 0 : i32
    return %arg0, %c0_i32 : i32, i32
  }
  func.func @transform_1(%arg0: i32) -> (i32, i32) {
    %c0_i32 = arith.constant 0 : i32
    %c0_i32_0 = arith.constant 0 : i32
    %c0_i32_1 = arith.constant 0 : i32
    return %c0_i32, %c0_i32_0 : i32, i32
  }
  func.func @transform_2(%arg0: i32) -> (i32, i32) {
    %c0_i32 = arith.constant 0 : i32
    %c0_i32_0 = arith.constant 0 : i32
    %c0_i32_1 = arith.constant 0 : i32
    return %c0_i32, %c0_i32_0 : i32, i32
  }
  func.func @transform_3(%arg0: i32) -> (i32, i32) {
    %c0_i32 = arith.constant 0 : i32
    %c0_i32_0 = arith.constant 0 : i32
    %c0_i32_1 = arith.constant 0 : i32
    return %c0_i32, %c0_i32_0 : i32, i32
  }
  func.func @transform_4(%arg0: i32) -> (i32, i32) {
    %c0_i32 = arith.constant 0 : i32
    %c0_i32_0 = arith.constant 0 : i32
    %c0_i32_1 = arith.constant 0 : i32
    return %c0_i32, %c0_i32_0 : i32, i32
  }
  func.func @transform_5(%arg0: i32) -> (i32, i32) {
    %c0_i32 = arith.constant 0 : i32
    %c0_i32_0 = arith.constant 0 : i32
    return %arg0, %c0_i32 : i32, i32
  }
  func.func @transform_6(%arg0: i32) -> (i32, i32) {
    %c0_i32 = arith.constant 0 : i32
    %c0_i32_0 = arith.constant 0 : i32
    return %arg0, %c0_i32 : i32, i32
  }
}

</mosaic_0001>

<bundles_post_ra>
// kernel: tpu_custom_call.1
= control target key start
LH: loop header
LB: loop body
LE: loop exit
PB: predicated region body
PF: predicated region fallthrough
CT: control target
= control target key end

     0   :  { %vm102_vm0 = vcmask 261120   ;;  %vm408_vm1 = vcmask 257024   ;;  %s936_s1 = inlined_call_operand.vmem [shape: bf16[32,32], index: 1, kind: input, shape index: {}]   ;;  %s937_s3 = inlined_call_operand.vmem [shape: bf16[32,32], index: 3, kind: input, shape index: {}]   ;;  %s938_s0 = inlined_call_operand.vmem [shape: bf16[128,32], index: 0, kind: input, shape index: {}]   ;;  %s939_s2 = inlined_call_operand.vmem [shape: f32[1,32], index: 2, kind: input, shape index: {}]   ;;  %s940_s4 = inlined_call_operand.vmem [shape: f32[1,32], index: 4, kind: input, shape index: {}]   ;;  %s941_s5 = inlined_call_operand.vmem [shape: bf16[128,32], index: 5, kind: output, shape index: {0}]   ;;  %s942_s6 = inlined_call_operand.vmem [shape: bf16[128,32], index: 6, kind: output, shape index: {1}]  }
   0x1   :  { %v667_v0 = vld [vmem:[%s936_s1 + $0x8] sm:$0xff]   ;;  %v669_v2 = vld [vmem:[%s936_s1] sm:$0xff]   ;;  %v673_v6 = vld [vmem:[%s938_s0 + $0x10] sm:$0xff]  }
   0x2   :  { %v668_v1 = vld [vmem:[%s937_s3 + $0x8] sm:$0xff]   ;;  %627 = vmatprep.subr.bf16.mxu0 %v667_v0  ;;  %v670_v3 = vld [vmem:[%s937_s3] sm:$0xff]   ;;  %v674_v7 = vld [vmem:[%s938_s0 + $0x18] sm:$0xff]  }
   0x3   :  { %647 = vmatprep.subr.bf16.mxu1 %v668_v1  ;;  %628 = vmatpush3.bf16.msra.mxu0 %v667_v0  ;;  %v671_v4 = vld [vmem:[%s938_s0] sm:$0xff]   ;;  %v672_v5 = vld [vmem:[%s938_s0 + $0x8] sm:$0xff]   ;;  %v677_v10 = vld [vmem:[%s938_s0 + $0x30] sm:$0xff]  }
   0x4   :  { %648 = vmatpush3.bf16.msra.mxu1 %v668_v1  ;;  %629 = vmatprep.subr.bf16.mxu0 %v669_v2  ;;  %v675_v8 = vld [vmem:[%s938_s0 + $0x20] sm:$0xff]   ;;  %v676_v9 = vld [vmem:[%s938_s0 + $0x28] sm:$0xff]   ;;  %v678_v11 = vld [vmem:[%s938_s0 + $0x38] sm:$0xff]  }
   0x5   :  { %649 = vmatprep.subr.bf16.mxu1 %v670_v3  ;;  %631 = vmatprep.mubr.msk.bf16.mxu0 %vm102_vm0, %v671_v4  ;;  %v769_v12 = vld [vmem:[%s939_s2] ss:$0 sm:$0xff] }
   0x6   :  { %651 = vmatprep.mubr.msk.bf16.mxu1 %vm102_vm0, %v671_v4  ;;  %v774_v13 = vld [vmem:[%s940_s4] ss:$0 sm:$0xff] }
   0x7   :  { %630 = vmatpush3.bf16.msra.mxu0 %v669_v2 }
   0x8   :  { %650 = vmatpush3.bf16.msra.mxu1 %v670_v3 }
   0xa   :  { %632 = vmatmul.mubr.msk.bf16.vlgmr.msra.gmra.mxu0 %vm102_vm0, %v672_v5 }
   0xb   :  { %652 = vmatmul.mubr.msk.bf16.vlgmr.msra.gmra.mxu1 %vm102_vm0, %v672_v5  ;;  %635 = vmatprep.mubr.msk.bf16.mxu0 %vm102_vm0, %v673_v6 }
   0xc   :  { %655 = vmatprep.mubr.msk.bf16.mxu1 %vm102_vm0, %v673_v6 }
  0x12   :  { %636 = vmatmul.mubr.msk.bf16.gmra.mxu0 %vm102_vm0, %v674_v7 }
  0x13   :  { %656 = vmatmul.mubr.msk.bf16.gmra.mxu1 %vm102_vm0, %v674_v7  ;;  %639 = vmatprep.mubr.msk.bf16.mxu0 %vm102_vm0, %v675_v8 }
  0x14   :  { %659 = vmatprep.mubr.msk.bf16.mxu1 %vm102_vm0, %v675_v8 }
  0x1a   :  { %640 = vmatmul.mubr.msk.bf16.gmra.mxu0 %vm102_vm0, %v676_v9 }
  0x1b   :  { %660 = vmatmul.mubr.msk.bf16.gmra.mxu1 %vm102_vm0, %v676_v9  ;;  %643 = vmatprep.mubr.msk.bf16.mxu0 %vm102_vm0, %v677_v10 }
  0x1c   :  { %663 = vmatprep.mubr.msk.bf16.mxu1 %vm102_vm0, %v677_v10 }
  0x22   :  { %644 = vmatmul.mubr.msk.bf16.gmra.mxu0 %vm102_vm0, %v678_v11 }
  0x23   :  { %664 = vmatmul.mubr.msk.bf16.gmra.mxu1 %vm102_vm0, %v678_v11 }
  0xca   :  { %v633_v14 = vpop.f32.mrf.mxu0 }
  0xcb   :  { %v170_v15 = vadd.f32 %v633_v14, %v769_v12  ;;  %v653_v16 = vpop.f32.mrf.mxu1 }
  0xcc   :  { %v290_v17 = vadd.f32 %v653_v16, %v774_v13  ;;  %v161_v18 = vpop.f32.mrf.mxu0 }
  0xcd   :  { %v577_v19 = vpack.c.bf16 %v170_v15, %v170_v15  ;;  %v162_v20 = vadd.f32 %v769_v12, %v161_v18  ;;  %v281_v21 = vpop.f32.mrf.mxu1 }
  0xce   :  { %v593_v22 = vpack.c.bf16 %v290_v17, %v290_v17  ;;  %v282_v23 = vadd.f32 %v774_v13, %v281_v21  ;;  %v634_v24 = vpop.f32.mrf.mxu0 }
  0xcf   :  { %411 = vst.msk [vmem:[%s941_s5 + $0x8] sm:$0xf] %vm408_vm1, %v577_v19  ;;  %v575_v25 = vpack.c.bf16 %v162_v20, %v162_v20  ;;  %v173_v26 = vadd.f32 %v634_v24, %v769_v12  ;;  %v654_v27 = vpop.f32.mrf.mxu1 }
  0xd0   :  { %491 = vst.msk [vmem:[%s942_s6 + $0x8] sm:$0xf] %vm408_vm1, %v593_v22  ;;  %v591_v28 = vpack.c.bf16 %v282_v23, %v282_v23  ;;  %v293_v29 = vadd.f32 %v654_v27, %v774_v13  ;;  %v164_v30 = vpop.f32.mrf.mxu0 }
  0xd1   :  { %409 = vst.msk [vmem:[%s941_s5] sm:$0xf] %vm408_vm1, %v575_v25  ;;  %v578_v31 = vpack.c.bf16 %v173_v26, %v173_v26  ;;  %v165_v32 = vadd.f32 %v769_v12, %v164_v30  ;;  %v284_v33 = vpop.f32.mrf.mxu1 }
  0xd2   :  { %489 = vst.msk [vmem:[%s942_s6] sm:$0xf] %vm408_vm1, %v591_v28  ;;  %v594_v34 = vpack.c.bf16 %v293_v29, %v293_v29  ;;  %v285_v35 = vadd.f32 %v774_v13, %v284_v33  ;;  %v637_v36 = vpop.f32.mrf.mxu0 }
  0xd3   :  { %412 = vst.msk [vmem:[%s941_s5 + $0xc] sm:$0xf] %vm408_vm1, %v578_v31  ;;  %v576_v37 = vpack.c.bf16 %v165_v32, %v165_v32  ;;  %v186_v38 = vadd.f32 %v637_v36, %v769_v12  ;;  %v657_v39 = vpop.f32.mrf.mxu1 }
  0xd4   :  { %492 = vst.msk [vmem:[%s942_s6 + $0xc] sm:$0xf] %vm408_vm1, %v594_v34  ;;  %v592_v40 = vpack.c.bf16 %v285_v35, %v285_v35  ;;  %v306_v41 = vadd.f32 %v657_v39, %v774_v13  ;;  %v177_v42 = vpop.f32.mrf.mxu0 }
  0xd5   :  { %410 = vst.msk [vmem:[%s941_s5 + $0x4] sm:$0xf] %vm408_vm1, %v576_v37  ;;  %v581_v43 = vpack.c.bf16 %v186_v38, %v186_v38  ;;  %v178_v44 = vadd.f32 %v769_v12, %v177_v42  ;;  %v297_v45 = vpop.f32.mrf.mxu1 }
  0xd6   :  { %490 = vst.msk [vmem:[%s942_s6 + $0x4] sm:$0xf] %vm408_vm1, %v592_v40  ;;  %v597_v46 = vpack.c.bf16 %v306_v41, %v306_v41  ;;  %v298_v47 = vadd.f32 %v774_v13, %v297_v45  ;;  %v638_v48 = vpop.f32.mrf.mxu0 }
  0xd7   :  { %415 = vst.msk [vmem:[%s941_s5 + $0x18] sm:$0xf] %vm408_vm1, %v581_v43  ;;  %v579_v49 = vpack.c.bf16 %v178_v44, %v178_v44  ;;  %v189_v50 = vadd.f32 %v638_v48, %v769_v12  ;;  %v658_v51 = vpop.f32.mrf.mxu1 }
  0xd8   :  { %495 = vst.msk [vmem:[%s942_s6 + $0x18] sm:$0xf] %vm408_vm1, %v597_v46  ;;  %v595_v52 = vpack.c.bf16 %v298_v47, %v298_v47  ;;  %v309_v53 = vadd.f32 %v658_v51, %v774_v13  ;;  %v180_v54 = vpop.f32.mrf.mxu0 }
  0xd9   :  { %413 = vst.msk [vmem:[%s941_s5 + $0x10] sm:$0xf] %vm408_vm1, %v579_v49  ;;  %v582_v55 = vpack.c.bf16 %v189_v50, %v189_v50  ;;  %v181_v56 = vadd.f32 %v769_v12, %v180_v54  ;;  %v300_v57 = vpop.f32.mrf.mxu1 }
  0xda   :  { %493 = vst.msk [vmem:[%s942_s6 + $0x10] sm:$0xf] %vm408_vm1, %v595_v52  ;;  %v598_v58 = vpack.c.bf16 %v309_v53, %v309_v53  ;;  %v301_v59 = vadd.f32 %v774_v13, %v300_v57  ;;  %v641_v60 = vpop.f32.mrf.mxu0 }
  0xdb   :  { %416 = vst.msk [vmem:[%s941_s5 + $0x1c] sm:$0xf] %vm408_vm1, %v582_v55  ;;  %v580_v61 = vpack.c.bf16 %v181_v56, %v181_v56  ;;  %v202_v62 = vadd.f32 %v641_v60, %v769_v12  ;;  %v661_v63 = vpop.f32.mrf.mxu1 }
  0xdc   :  { %496 = vst.msk [vmem:[%s942_s6 + $0x1c] sm:$0xf] %vm408_vm1, %v598_v58  ;;  %v596_v0 = vpack.c.bf16 %v301_v59, %v301_v59  ;;  %v322_v1 = vadd.f32 %v661_v63, %v774_v13  ;;  %v193_v2 = vpop.f32.mrf.mxu0 }
  0xdd   :  { %414 = vst.msk [vmem:[%s941_s5 + $0x14] sm:$0xf] %vm408_vm1, %v580_v61  ;;  %v585_v3 = vpack.c.bf16 %v202_v62, %v202_v62  ;;  %v194_v4 = vadd.f32 %v769_v12, %v193_v2  ;;  %v313_v5 = vpop.f32.mrf.mxu1 }
  0xde   :  { %494 = vst.msk [vmem:[%s942_s6 + $0x14] sm:$0xf] %vm408_vm1, %v596_v0  ;;  %v601_v6 = vpack.c.bf16 %v322_v1, %v322_v1  ;;  %v314_v7 = vadd.f32 %v774_v13, %v313_v5  ;;  %v642_v8 = vpop.f32.mrf.mxu0 }
  0xdf   :  { %419 = vst.msk [vmem:[%s941_s5 + $0x28] sm:$0xf] %vm408_vm1, %v585_v3  ;;  %v583_v9 = vpack.c.bf16 %v194_v4, %v194_v4  ;;  %v205_v10 = vadd.f32 %v642_v8, %v769_v12  ;;  %v662_v11 = vpop.f32.mrf.mxu1 }
  0xe0   :  { %499 = vst.msk [vmem:[%s942_s6 + $0x28] sm:$0xf] %vm408_vm1, %v601_v6  ;;  %v599_v14 = vpack.c.bf16 %v314_v7, %v314_v7  ;;  %v325_v15 = vadd.f32 %v662_v11, %v774_v13  ;;  %v196_v16 = vpop.f32.mrf.mxu0 }
  0xe1   :  { %417 = vst.msk [vmem:[%s941_s5 + $0x20] sm:$0xf] %vm408_vm1, %v583_v9  ;;  %v586_v17 = vpack.c.bf16 %v205_v10, %v205_v10  ;;  %v197_v18 = vadd.f32 %v769_v12, %v196_v16  ;;  %v316_v19 = vpop.f32.mrf.mxu1 }
  0xe2   :  { %497 = vst.msk [vmem:[%s942_s6 + $0x20] sm:$0xf] %vm408_vm1, %v599_v14  ;;  %v602_v20 = vpack.c.bf16 %v325_v15, %v325_v15  ;;  %v317_v21 = vadd.f32 %v774_v13, %v316_v19  ;;  %v645_v22 = vpop.f32.mrf.mxu0 }
  0xe3   :  { %420 = vst.msk [vmem:[%s941_s5 + $0x2c] sm:$0xf] %vm408_vm1, %v586_v17  ;;  %v584_v23 = vpack.c.bf16 %v197_v18, %v197_v18  ;;  %v218_v24 = vadd.f32 %v645_v22, %v769_v12  ;;  %v665_v25 = vpop.f32.mrf.mxu1 }
  0xe4   :  { %500 = vst.msk [vmem:[%s942_s6 + $0x2c] sm:$0xf] %vm408_vm1, %v602_v20  ;;  %v600_v26 = vpack.c.bf16 %v317_v21, %v317_v21  ;;  %v338_v27 = vadd.f32 %v665_v25, %v774_v13  ;;  %v209_v28 = vpop.f32.mrf.mxu0 }
  0xe5   :  { %418 = vst.msk [vmem:[%s941_s5 + $0x24] sm:$0xf] %vm408_vm1, %v584_v23  ;;  %v589_v29 = vpack.c.bf16 %v218_v24, %v218_v24  ;;  %v210_v30 = vadd.f32 %v769_v12, %v209_v28  ;;  %v329_v31 = vpop.f32.mrf.mxu1 }
  0xe6   :  { %498 = vst.msk [vmem:[%s942_s6 + $0x24] sm:$0xf] %vm408_vm1, %v600_v26  ;;  %v605_v32 = vpack.c.bf16 %v338_v27, %v338_v27  ;;  %v330_v33 = vadd.f32 %v774_v13, %v329_v31  ;;  %v646_v34 = vpop.f32.mrf.mxu0 }
  0xe7   :  { %423 = vst.msk [vmem:[%s941_s5 + $0x38] sm:$0xf] %vm408_vm1, %v589_v29  ;;  %v587_v35 = vpack.c.bf16 %v210_v30, %v210_v30  ;;  %v221_v36 = vadd.f32 %v646_v34, %v769_v12  ;;  %v666_v37 = vpop.f32.mrf.mxu1 }
  0xe8   :  { %503 = vst.msk [vmem:[%s942_s6 + $0x38] sm:$0xf] %vm408_vm1, %v605_v32  ;;  %v603_v38 = vpack.c.bf16 %v330_v33, %v330_v33  ;;  %v341_v39 = vadd.f32 %v666_v37, %v774_v13  ;;  %v212_v40 = vpop.f32.mrf.mxu0 }
  0xe9   :  { %421 = vst.msk [vmem:[%s941_s5 + $0x30] sm:$0xf] %vm408_vm1, %v587_v35  ;;  %v590_v41 = vpack.c.bf16 %v221_v36, %v221_v36  ;;  %v213_v42 = vadd.f32 %v769_v12, %v212_v40  ;;  %v332_v43 = vpop.f32.mrf.mxu1 }
  0xea   :  { %501 = vst.msk [vmem:[%s942_s6 + $0x30] sm:$0xf] %vm408_vm1, %v603_v38  ;;  %v606_v44 = vpack.c.bf16 %v341_v39, %v341_v39  ;;  %v333_v45 = vadd.f32 %v774_v13, %v332_v43 }
  0xeb   :  { %424 = vst.msk [vmem:[%s941_s5 + $0x3c] sm:$0xf] %vm408_vm1, %v590_v41  ;;  %v588_v46 = vpack.c.bf16 %v213_v42, %v213_v42 }
  0xec   :  { %504 = vst.msk [vmem:[%s942_s6 + $0x3c] sm:$0xf] %vm408_vm1, %v606_v44  ;;  %v604_v12 = vpack.c.bf16 %v333_v45, %v333_v45 }
  0xed   :  { %422 = vst.msk [vmem:[%s941_s5 + $0x34] sm:$0xf] %vm408_vm1, %v588_v46 }
  0xee   :  { %502 = vst.msk [vmem:[%s942_s6 + $0x34] sm:$0xf] %vm408_vm1, %v604_v12 }

</bundles_post_ra>
